<compile_context>
chip_gen: v7x
topology: tpu7x:2x2x1
jax: 0.10.0
libtpu: 0.0.40
codegen_flags: <defaults>
</compile_context>

<pallas_src>
import functools

import jax
import jax.numpy as jnp
from jax.experimental import pallas as pl
from jax.experimental.pallas import tpu as pltpu


def _round_up(x, m):
    return ((x + m - 1) // m) * m


def _qrdqn_kernel(obs_ref, wrep_ref, w1_ref, w2_ref, out_ref, *,
                  obs_dim, state_pad, hidden_pad):
    """Fused MLP: state -> hidden -> [eval_Z_flat | eval_Q | 0-pad].

    Every weight buffer carries its bias as an extra, sublane-aligned row and is
    zero-padded to 128-lane-multiple column counts, so all contraction slices are
    aligned views, all activations fill whole vregs, and the two output stores
    are unmasked full-lane stores (no slab zero-fill needed)."""
    f32 = jnp.float32
    x = obs_ref[...].astype(wrep_ref.dtype)

    # representation: ReLU(obs @ W_rep + b_rep); bias is the row at index obs_dim.
    state = jnp.dot(x, wrep_ref[:obs_dim, :], preferred_element_type=f32)
    state = jnp.maximum(state + wrep_ref[obs_dim:obs_dim + 1, :], 0.0)

    # Z-head hidden layer: ReLU(state @ W1 + b1); K = state_pad (128-aligned).
    h = jnp.dot(state.astype(w1_ref.dtype), w1_ref[:state_pad, :],
                preferred_element_type=f32)
    h = jnp.maximum(h + w1_ref[state_pad:state_pad + 1, :], 0.0)

    # Z-head output.  W2 is packed as [W2 | W2 @ avg | 0-pad]; the A used trailing
    # columns therefore ARE eval_Q = eval_Z.mean(-1), computed for free on the MXU.
    zq = jnp.dot(h.astype(w2_ref.dtype), w2_ref[:hidden_pad, :],
                 preferred_element_type=f32)
    zq = zq + w2_ref[hidden_pad:hidden_pad + 1, :]

    # Two unmasked, 128-lane-aligned stores covering the whole slab.  The padding
    # lanes are exactly zero because padded weight columns / biases are zero.
    out_ref[:, 0:state_pad] = state.astype(out_ref.dtype)
    out_ref[:, state_pad:state_pad + zq.shape[-1]] = zq.astype(out_ref.dtype)


def pack_qrdqn_params(params, action_dim, quantile_num, dtype=jnp.float32):
    """One-time packing (do this OUTSIDE the actor / training loop):
       - biases appended as an extra (8-sublane-aligned) row of each weight,
       - W2 extended with W2 @ avg columns so the last matmul also emits eval_Q,
       - all column counts zero-padded to multiples of 128 so in-kernel stores
         are unmasked and the output slab needs no zero fill."""
    w_rep, b_rep, w1, b1, w2, b2 = params
    obs_dim, state_dim = w_rep.shape
    hidden_dim = w1.shape[1]

    state_pad = _round_up(state_dim, 128)
    hidden_pad = _round_up(hidden_dim, 128)
    zq_pad = _round_up(action_dim * quantile_num + action_dim, 128)

    # avg[i, j] = 1/Q if i // Q == j  (action is the slow axis of the flat Z
    # output, matching torch's .view(-1, action_dim, quantile_num)).
    avg = (jnp.repeat(jnp.eye(action_dim, dtype=jnp.float32), quantile_num, axis=0)
           / quantile_num)                                      # (A*Q, A)
    w2_ext = jnp.concatenate([w2, w2 @ avg], axis=1)            # (H, A*Q + A)
    b2_ext = jnp.concatenate([b2, b2 @ avg], axis=0)            # (A*Q + A,)

    def _pack(w, b, bias_row, total_cols):
        rows = _round_up(bias_row + 1, 8)
        out = jnp.zeros((rows, total_cols), jnp.float32)
        out = out.at[:w.shape[0], :w.shape[1]].set(w)
        out = out.at[bias_row, :b.shape[0]].set(b)
        return out.astype(dtype)

    wrep_p = _pack(w_rep, b_rep, obs_dim, state_pad)        # (ru(obs+1,8), 128k)
    w1_p = _pack(w1, b1, state_pad, hidden_pad)              # (state_pad+8, 128k)
    w2_p = _pack(w2_ext, b2_ext, hidden_pad, zq_pad)         # (hidden_pad+8, 128k)
    # TODO(synk): for the B~8 actor loop, pin these ~50 KiB of packed weights in
    # VMEM across steps via a cross-pallas_call prefetch (P10: sem + VMEM-ref
    # outputs, has_side_effects=True) instead of re-DMAing them every step.
    return wrep_p, w1_p, w2_p


@functools.partial(jax.jit, static_argnames=(
    "action_dim", "quantile_num", "state_dim", "block_m", "out_dtype"))
def qrdqn_forward(obs, packed_params, *, action_dim, quantile_num, state_dim,
                  block_m=512, out_dtype=jnp.float32):
    """Returns (outputs_state, argmax_action, eval_Z), mirroring the torch forward."""
    wrep_p, w1_p, w2_p = packed_params
    B, obs_dim = obs.shape
    state_pad = wrep_p.shape[1]
    hidden_pad = w1_p.shape[1]
    zq_pad = w2_p.shape[1]
    aq = action_dim * quantile_num
    out_w = state_pad + zq_pad

    # Batch tiling:
    #  * small batches (actor path): one fused block, grid=(1,)
    #  * large batches (replay path): big blocks (default 512 rows) to amortize
    #    per-grid-step overhead, but always >= 2 blocks when B > 256 so
    #    dimension_semantics=("parallel",) shards across both v7x TensorCores.
    if B <= 256:
        bm = B
    else:
        bm = max(128, min(block_m, _round_up(pl.cdiv(B, 2), 8)))
    Bp = _round_up(B, bm)
    obs_p = obs if Bp == B else jnp.pad(obs, ((0, Bp - B), (0, 0)))

    kernel = functools.partial(
        _qrdqn_kernel, obs_dim=obs_dim, state_pad=state_pad, hidden_pad=hidden_pad)

    flops = 2 * Bp * (obs_dim * state_pad + state_pad * hidden_pad
                      + hidden_pad * zq_pad)
    bytes_accessed = (obs_p.size * obs_p.dtype.itemsize
                      + sum(w.size * w.dtype.itemsize for w in (wrep_p, w1_p, w2_p))
                      + Bp * out_w * jnp.dtype(out_dtype).itemsize)

    slab = pl.pallas_call(
        kernel,
        out_shape=jax.ShapeDtypeStruct((Bp, out_w), out_dtype),
        grid_spec=pl.GridSpec(
            grid=(Bp // bm,),
            in_specs=[
                pl.BlockSpec((bm, obs_dim), lambda i: (i, 0)),
                pl.BlockSpec(wrep_p.shape, lambda i: (0, 0)),   # block-invariant
                pl.BlockSpec(w1_p.shape, lambda i: (0, 0)),
                pl.BlockSpec(w2_p.shape, lambda i: (0, 0)),
            ],
            out_specs=pl.BlockSpec((bm, out_w), lambda i: (i, 0)),
        ),
        compiler_params=pltpu.CompilerParams(
            dimension_semantics=("parallel",)),
        cost_estimate=pl.CostEstimate(
            flops=flops, transcendentals=0, bytes_accessed=bytes_accessed),
    )(obs_p, wrep_p, w1_p, w2_p)

    slab = slab[:B]                 # drop padded batch rows before any reduction
    state = slab[:, :state_dim]
    eval_Z = slab[:, state_pad:state_pad + aq].reshape(B, action_dim, quantile_num)
    eval_Q = slab[:, state_pad + aq:state_pad + aq + action_dim]
    argmax_action = jnp.argmax(eval_Q, axis=-1)   # tiny reduce, fused under jit
    return state, argmax_action, eval_Z


def init_params(key, obs_dim, state_dim, hidden_dim, out_dim):
    ks = jax.random.split(key, 6)
    scale = 0.1
    w_rep = jax.random.normal(ks[0], (obs_dim, state_dim), jnp.float32) * scale
    b_rep = jax.random.normal(ks[1], (state_dim,), jnp.float32) * scale
    w1 = jax.random.normal(ks[2], (state_dim, hidden_dim), jnp.float32) * scale
    b1 = jax.random.normal(ks[3], (hidden_dim,), jnp.float32) * scale
    w2 = jax.random.normal(ks[4], (hidden_dim, out_dim), jnp.float32) * scale
    b2 = jax.random.normal(ks[5], (out_dim,), jnp.float32) * scale
    return (w_rep, b_rep, w1, b1, w2, b2)


if __name__ == "__main__":
    key = jax.random.PRNGKey(0)
    k_obs, k_param = jax.random.split(key)

    obs_dim, state_dim, hidden_dim = 16, 64, 64
    action_dim, quantile_num = 6, 16

    params = init_params(k_param, obs_dim, state_dim, hidden_dim,
                         action_dim * quantile_num)
    # pack once (outside the per-step loop), run the fused forward
    packed = pack_qrdqn_params(params, action_dim, quantile_num)
    w_rep, b_rep, w1, b1, w2, b2 = params

    for batch in (8, 384):   # actor-sized (single block) and replay-sized (2 blocks)
        obs = jax.random.normal(jax.random.fold_in(k_obs, batch),
                                (batch, obs_dim), jnp.float32)
        state, argmax_action, eval_Z = qrdqn_forward(
            obs, packed, action_dim=action_dim, quantile_num=quantile_num,
            state_dim=state_dim)
        jax.block_until_ready((state, argmax_action, eval_Z))

        # lightweight sanity check against a plain-JAX reference
        s_ref = jnp.maximum(obs @ w_rep + b_rep, 0.0)
        h_ref = jnp.maximum(s_ref @ w1 + b1, 0.0)
        z_ref = (h_ref @ w2 + b2).reshape(batch, action_dim, quantile_num)
        a_ref = jnp.argmax(z_ref.mean(-1), axis=-1)

        assert state.shape == (batch, state_dim)
        assert eval_Z.shape == (batch, action_dim, quantile_num)
        assert jnp.allclose(state, s_ref, atol=1e-4)
        assert jnp.allclose(eval_Z, z_ref, atol=1e-4)
        assert jnp.array_equal(argmax_action, a_ref)

    print("KERNEL_OK")
</pallas_src>

<mosaic_0001>
module attributes {stable_mosaic.version = 11 : i64} {
  func.func @_qrdqn_kernel(%arg0: i32, %arg1: memref<8x16xf32, #tpu.memory_space<vmem>>, %arg2: memref<24x128xf32, #tpu.memory_space<vmem>>, %arg3: memref<136x128xf32, #tpu.memory_space<vmem>>, %arg4: memref<136x128xf32, #tpu.memory_space<vmem>>, %arg5: memref<8x256xf32, #tpu.memory_space<vmem>>) attributes {dimension_semantics = [#tpu.dimension_semantics<parallel>], iteration_bounds = array<i64: 1>, scalar_prefetch = 0 : i64, scratch_operands = 0 : i64, tpu.core_type = #tpu.core_type<tc>, window_params = [{transform_indices = @transform_0, window_bounds = array<i64: 8, 16>}, {pipeline_mode = #tpu.pipeline_mode<synchronous>, transform_indices = @transform_1, window_bounds = array<i64: 24, 128>}, {pipeline_mode = #tpu.pipeline_mode<synchronous>, transform_indices = @transform_2, window_bounds = array<i64: 136, 128>}, {pipeline_mode = #tpu.pipeline_mode<synchronous>, transform_indices = @transform_3, window_bounds = array<i64: 136, 128>}, {transform_indices = @transform_4, window_bounds = array<i64: 8, 256>}]} {
    %c0 = arith.constant 0 : index
    %c0_0 = arith.constant 0 : index
    %0 = vector.load %arg1[%c0, %c0_0] : memref<8x16xf32, #tpu.memory_space<vmem>>, vector<8x16xf32>
    %c0_1 = arith.constant 0 : index
    %c0_2 = arith.constant 0 : index
    %1 = vector.load %arg2[%c0_1, %c0_2] : memref<24x128xf32, #tpu.memory_space<vmem>>, vector<16x128xf32>
    %cst = arith.constant dense<0.000000e+00> : vector<8x128xf32>
    %2 = tpu.matmul %0, %1, %cst {dimension_numbers = #tpu.dot_dimension_numbers<[1], [0], [0], [1], [0, 0, 1, 1], [], []>} : vector<8x16xf32>, vector<16x128xf32>, vector<8x128xf32> -> vector<8x128xf32>
    %c16 = arith.constant 16 : index
    %c0_3 = arith.constant 0 : index
    %3 = vector.load %arg2[%c16, %c0_3] : memref<24x128xf32, #tpu.memory_space<vmem>>, vector<1x128xf32>
    %4 = vector.broadcast %3 : vector<1x128xf32> to vector<8x128xf32>
    %5 = arith.addf %2, %4 : vector<8x128xf32>
    %cst_4 = arith.constant 0.000000e+00 : f32
    %6 = vector.broadcast %cst_4 : f32 to vector<8x128xf32>
    %7 = arith.maximumf %5, %6 : vector<8x128xf32>
    %c0_5 = arith.constant 0 : index
    %c0_6 = arith.constant 0 : index
    %8 = vector.load %arg3[%c0_5, %c0_6] : memref<136x128xf32, #tpu.memory_space<vmem>>, vector<128x128xf32>
    %cst_7 = arith.constant dense<0.000000e+00> : vector<8x128xf32>
    %9 = tpu.matmul %7, %8, %cst_7 {dimension_numbers = #tpu.dot_dimension_numbers<[1], [0], [0], [1], [0, 0, 1, 1], [], []>} : vector<8x128xf32>, vector<128x128xf32>, vector<8x128xf32> -> vector<8x128xf32>
    %c128 = arith.constant 128 : index
    %c0_8 = arith.constant 0 : index
    %10 = vector.load %arg3[%c128, %c0_8] : memref<136x128xf32, #tpu.memory_space<vmem>>, vector<1x128xf32>
    %11 = vector.broadcast %10 : vector<1x128xf32> to vector<8x128xf32>
    %12 = arith.addf %9, %11 : vector<8x128xf32>
    %cst_9 = arith.constant 0.000000e+00 : f32
    %13 = vector.broadcast %cst_9 : f32 to vector<8x128xf32>
    %14 = arith.maximumf %12, %13 : vector<8x128xf32>
    %c0_10 = arith.constant 0 : index
    %c0_11 = arith.constant 0 : index
    %15 = vector.load %arg4[%c0_10, %c0_11] : memref<136x128xf32, #tpu.memory_space<vmem>>, vector<128x128xf32>
    %cst_12 = arith.constant dense<0.000000e+00> : vector<8x128xf32>
    %16 = tpu.matmul %14, %15, %cst_12 {dimension_numbers = #tpu.dot_dimension_numbers<[1], [0], [0], [1], [0, 0, 1, 1], [], []>} : vector<8x128xf32>, vector<128x128xf32>, vector<8x128xf32> -> vector<8x128xf32>
    %c128_13 = arith.constant 128 : index
    %c0_14 = arith.constant 0 : index
    %17 = vector.load %arg4[%c128_13, %c0_14] : memref<136x128xf32, #tpu.memory_space<vmem>>, vector<1x128xf32>
    %18 = vector.broadcast %17 : vector<1x128xf32> to vector<8x128xf32>
    %19 = arith.addf %16, %18 : vector<8x128xf32>
    %c0_15 = arith.constant 0 : index
    %c0_16 = arith.constant 0 : index
    %20 = vector.load %arg5[%c0_15, %c0_16] : memref<8x256xf32, #tpu.memory_space<vmem>>, vector<8x128xf32>
    tpu.vector_store %arg5[%c0_15, %c0_16], %7 {strides = array<i32>} : memref<8x256xf32, #tpu.memory_space<vmem>>, vector<8x128xf32>,
    %c0_17 = arith.constant 0 : index
    %c128_18 = arith.constant 128 : index
    %21 = vector.load %arg5[%c0_17, %c128_18] : memref<8x256xf32, #tpu.memory_space<vmem>>, vector<8x128xf32>
    tpu.vector_store %arg5[%c0_17, %c128_18], %19 {strides = array<i32>} : memref<8x256xf32, #tpu.memory_space<vmem>>, vector<8x128xf32>,
    return
  }
  func.func @transform_0(%arg0: i32) -> (i32, i32) {
    %c0_i32 = arith.constant 0 : i32
    %c0_i32_0 = arith.constant 0 : i32
    return %arg0, %c0_i32 : i32, i32
  }
  func.func @transform_1(%arg0: i32) -> (i32, i32) {
    %c0_i32 = arith.constant 0 : i32
    %c0_i32_0 = arith.constant 0 : i32
    %c0_i32_1 = arith.constant 0 : i32
    return %c0_i32, %c0_i32_0 : i32, i32
  }
  func.func @transform_2(%arg0: i32) -> (i32, i32) {
    %c0_i32 = arith.constant 0 : i32
    %c0_i32_0 = arith.constant 0 : i32
    %c0_i32_1 = arith.constant 0 : i32
    return %c0_i32, %c0_i32_0 : i32, i32
  }
  func.func @transform_3(%arg0: i32) -> (i32, i32) {
    %c0_i32 = arith.constant 0 : i32
    %c0_i32_0 = arith.constant 0 : i32
    %c0_i32_1 = arith.constant 0 : i32
    return %c0_i32, %c0_i32_0 : i32, i32
  }
  func.func @transform_4(%arg0: i32) -> (i32, i32) {
    %c0_i32 = arith.constant 0 : i32
    %c0_i32_0 = arith.constant 0 : i32
    return %arg0, %c0_i32 : i32, i32
  }
}

</mosaic_0001>

<bundles_post_ra>
// kernel: qrdqn_forward.1
= control target key start
LH: loop header
LB: loop body
LE: loop exit
PB: predicated region body
PF: predicated region fallthrough
CT: control target
= control target key end

     0   :  { %9 = vsyncpa [#allocation3], 0  ;;  %s734_s0 = inlined_call_operand.hbm [shape: f32[8,16], index: 0, kind: input, shape index: {}]   ;;  %s735_s1 = inlined_call_operand.hbm [shape: f32[24,128], index: 1, kind: input, shape index: {}]   ;;  %s736_s2 = inlined_call_operand.hbm [shape: f32[136,128], index: 2, kind: input, shape index: {}]   ;;  %s737_s3 = inlined_call_operand.hbm [shape: f32[136,128], index: 3, kind: input, shape index: {}]   ;;  %s738_s4 = inlined_call_operand.vmem [shape: f32[8,256], index: 4, kind: output, shape index: {}]  }
   0x1   :  { %10 = vsyncpa [#allocation5], 0 }
   0x2   :  { %11 = vsyncpa [#allocation8], 0  ;;  %s617_s15 = smov [#allocation4]   ;;  %s523_s19 = scalar_lea.hbm %s735_s1, 384 }
   0x3   :  { %s27_s16 = sshll.u32 %s617_s15, 4  ;;  %p524_p0 = scmp.ne.s32.totalorder %s735_s1, %s523_s19  ;;  %s28_s16 = int_to_ptr.vmem [resolvable:$true] %s27_s16 }
   0x4   :  { %p527_p1 = scmp.lt.u32.totalorder %s523_s19, %s735_s1 }
   0x6   :  { %p529_p2 = pnand %p527_p1, %p524_p0 }
   0x8   :  { %532 = shalt.err (!%p529_p2)
}
   0x9   :  { %s533_s24 = scalar_lea.vmem %s28_s16, 384  ;;  %p538_p4 = scmp.lt.s32.totalorder %s28_s16, %s28_s16 }
   0xa   :  { %p534_p3 = scmp.ne.s32.totalorder %s28_s16, %s533_s24  ;;  %p539_p5 = scmp.lt.s32.totalorder %s533_s24, %s533_s24 }
   0xc   :  { %p540_p6 = por %p539_p5, %p538_p4 }
   0xe   :  { %p541_p7 = pnand %p540_p6, %p534_p3 }
  0x10   :  { %544 = shalt.err (!%p541_p7)
}
  0x11   :  { %s618_s25 = smov 128   ;;  %s619_s26 = smov 8  }
  0x12   :  { %33 = dma.hbm_to_vmem [thread:$0]  %s735_s1, 384, %s28_s16, [#allocation5], %s618_s25, %s618_s25, %s619_s26  }
  0x13   :  { %s620_s29 = smov [#allocation2]   ;;  %s621_s5 = smov [#allocation6]  }
  0x14   :  { %s18_s30 = sshll.u32 %s620_s29, 4  ;;  %s39_s6 = sshll.u32 %s621_s5, 4  ;;  %s19_s30 = int_to_ptr.vmem [resolvable:$true] %s18_s30  ;;  %s40_s6 = int_to_ptr.vmem [resolvable:$true] %s39_s6 }
  0x15   :  { %s545_s9 = scalar_lea.hbm %s734_s0, 128 }
  0x16   :  { %p546_p8 = scmp.ne.s32.totalorder %s734_s0, %s545_s9  ;;  %p549_p9 = scmp.lt.u32.totalorder %s545_s9, %s734_s0 }
  0x18   :  { %p551_p10 = pnand %p549_p9, %p546_p8 }
  0x1a   :  { %554 = shalt.err (!%p551_p10)
}
  0x1b   :  { %s555_s1 = scalar_lea.vmem %s19_s30, 128  ;;  %p560_p12 = scmp.lt.s32.totalorder %s19_s30, %s19_s30 }
  0x1c   :  { %p556_p11 = scmp.ne.s32.totalorder %s19_s30, %s555_s1  ;;  %p561_p13 = scmp.lt.s32.totalorder %s555_s1, %s555_s1 }
  0x1e   :  { %p562_p0 = por %p561_p13, %p560_p12 }
  0x20   :  { %p563_p1 = pnand %p562_p0, %p556_p11 }
  0x22   :  { %566 = shalt.err (!%p563_p1)
}
  0x23   :  { %21 = dma.hbm_to_vmem [thread:$0]  %s734_s0, 128, %s19_s30, [#allocation3]  }
  0x24   :  { %s567_s18 = scalar_lea.hbm %s736_s2, 2176 }
  0x25   :  { %p568_p2 = scmp.ne.s32.totalorder %s736_s2, %s567_s18  ;;  %p571_p3 = scmp.lt.u32.totalorder %s567_s18, %s736_s2 }
  0x27   :  { %p573_p4 = pnand %p571_p3, %p568_p2 }
  0x29   :  { %576 = shalt.err (!%p573_p4)
}
  0x2a   :  { %s577_s23 = scalar_lea.vmem %s40_s6, 2176  ;;  %p582_p6 = scmp.lt.s32.totalorder %s40_s6, %s40_s6 }
  0x2b   :  { %p578_p5 = scmp.ne.s32.totalorder %s40_s6, %s577_s23  ;;  %p583_p7 = scmp.lt.s32.totalorder %s577_s23, %s577_s23 }
  0x2d   :  { %p584_p8 = por %p583_p7, %p582_p6 }
  0x2f   :  { %p585_p9 = pnand %p584_p8, %p578_p5 }
  0x31   :  { %588 = shalt.err (!%p585_p9)
}
  0x32   :  { %45 = dma.hbm_to_vmem [thread:$0]  %s736_s2, 2176, %s40_s6, [#allocation5], %s618_s25, %s618_s25, %s619_s26  }
  0x33   :  { %s622_s27 = smov [#allocation7]   ;;  %s589_s5 = scalar_lea.hbm %s737_s3, 2176 }
  0x34   :  { %s51_s28 = sshll.u32 %s622_s27, 4  ;;  %p590_p10 = scmp.ne.s32.totalorder %s737_s3, %s589_s5  ;;  %s52_s28 = int_to_ptr.vmem [resolvable:$true] %s51_s28 }
  0x35   :  { %p593_p11 = scmp.lt.u32.totalorder %s589_s5, %s737_s3 }
  0x37   :  { %p595_p12 = pnand %p593_p11, %p590_p10 }
  0x39   :  { %598 = shalt.err (!%p595_p12)
}
  0x3a   :  { %s599_s11 = scalar_lea.vmem %s52_s28, 2176  ;;  %p604_p0 = scmp.lt.s32.totalorder %s52_s28, %s52_s28 }
  0x3b   :  { %p600_p13 = scmp.ne.s32.totalorder %s52_s28, %s599_s11  ;;  %p605_p1 = scmp.lt.s32.totalorder %s599_s11, %s599_s11 }
  0x3d   :  { %p606_p2 = por %p605_p1, %p604_p0 }
  0x3f   :  { %p607_p3 = pnand %p606_p2, %p600_p13 }
  0x41   :  { %610 = shalt.err (!%p607_p3)
}
  0x42   :  { %57 = dma.hbm_to_vmem [thread:$0]  %s737_s3, 2176, %s52_s28, [#allocation8], %s618_s25, %s618_s25, %s619_s26  }
  0x43   :  { %611 = dma.done.wait [#allocation3], 128  }
  0x44   :  { %612 = vsyncadd [#allocation3], 4294967168 }
  0x45   :  { %613 = dma.done.wait [#allocation5], 2560  }
  0x46   :  { %614 = vsyncadd [#allocation5], 4294964736 }
  0x47   :  { %615 = dma.done.wait [#allocation8], 2176  }
  0x48   :  { %616 = vsyncadd [#allocation8], 4294965120  ;;  %v623_v0 = vmov 0.0|0.0   ;;  %vm624_vm0 = vmmov 0   ;;  %v625_v1 = vmov 0.0   ;;  %v71_v2 = vld [vmem:[#allocation4] sm:$0xff] }
  0x49   :  { %463 = vmatprep.subr.bf16.mxu0 %v623_v0  ;;  %390 = vmatprep.mubr.msk.f32.mxu0 %vm624_vm0, %v625_v1  ;;  %v72_v3 = vld [vmem:[#allocation4 + $0x8] sm:$0xff]  ;;  %v153_v5 = vld [vmem:[#allocation6] sm:$0xff]  ;;  %v154_v6 = vld [vmem:[#allocation6 + $0x8] sm:$0xff]  ;;  %vm78_vm1 = vcmask 130048  }
  0x4a   :  { %466 = vmatprep.subr.bf16.mxu1 %v623_v0  ;;  %425 = vmatprep.mubr.msk.f32.mxu1 %vm624_vm0, %v625_v1  ;;  %v464_v4 = vpack.c.bf16 %v72_v3, %v71_v2  ;;  %v155_v7 = vld [vmem:[#allocation6 + $0x10] sm:$0xff]  ;;  %v467_v8 = vpack.c.bf16 %v154_v6, %v153_v5  ;;  %v156_v9 = vld [vmem:[#allocation6 + $0x18] sm:$0xff]  ;;  %v70_v10 = vld [vmem:[#allocation2] sm:$0xff] }
  0x4b   :  { %v470_v11 = vpack.c.bf16 %v156_v9, %v155_v7  ;;  %v157_v12 = vld [vmem:[#allocation6 + $0x20] sm:$0xff]  ;;  %v158_v13 = vld [vmem:[#allocation6 + $0x28] sm:$0xff]  ;;  %v159_v15 = vld [vmem:[#allocation6 + $0x30] sm:$0xff] }
  0x4c   :  { %465 = vmatpush3.bf16.msra.mxu0 %v464_v4  ;;  %468 = vmatpush3.bf16.msra.mxu1 %v467_v8  ;;  %v473_v14 = vpack.c.bf16 %v158_v13, %v157_v12  ;;  %v160_v16 = vld [vmem:[#allocation6 + $0x38] sm:$0xff]  ;;  %v161_v18 = vld [vmem:[#allocation6 + $0x40] sm:$0xff]  ;;  %v162_v19 = vld [vmem:[#allocation6 + $0x48] sm:$0xff] }
  0x4d   :  { %490 = vmatprep.subr.bf16.mxu0 %v623_v0  ;;  %469 = vmatprep.subr.bf16.mxu1 %v623_v0  ;;  %v476_v17 = vpack.c.bf16 %v160_v16, %v159_v15  ;;  %v479_v20 = vpack.c.bf16 %v162_v19, %v161_v18  ;;  %v163_v21 = vld [vmem:[#allocation6 + $0x50] sm:$0xff]  ;;  %v164_v22 = vld [vmem:[#allocation6 + $0x58] sm:$0xff]  ;;  %v165_v24 = vld [vmem:[#allocation6 + $0x60] sm:$0xff] }
  0x4e   :  { %v482_v23 = vpack.c.bf16 %v164_v22, %v163_v21  ;;  %v166_v25 = vld [vmem:[#allocation6 + $0x68] sm:$0xff]  ;;  %v167_v27 = vld [vmem:[#allocation6 + $0x70] sm:$0xff]  ;;  %v168_v28 = vld [vmem:[#allocation6 + $0x78] sm:$0xff] }
  0x4f   :  { %391 = vmatmul.mubr.msk.f32.vlgmr.msra.gmra.mrb[0].mxu0 %vm78_vm1, %v70_v10  ;;  %v485_v26 = vpack.c.bf16 %v166_v25, %v165_v24  ;;  %v488_v29 = vpack.c.bf16 %v168_v28, %v167_v27  ;;  %v245_v30 = vld [vmem:[#allocation7] sm:$0xff]  ;;  %v246_v31 = vld [vmem:[#allocation7 + $0x8] sm:$0xff]  ;;  %v247_v32 = vld [vmem:[#allocation7 + $0x10] sm:$0xff] }
  0x50   :  { %460 = vmatprep.mubr.msk.f32.mxu0 %vm624_vm0, %v625_v1  ;;  %471 = vmatpush3.bf16.msra.mxu1 %v470_v11  ;;  %v491_v33 = vpack.c.bf16 %v246_v31, %v245_v30  ;;  %v248_v34 = vld [vmem:[#allocation7 + $0x18] sm:$0xff]  ;;  %v249_v36 = vld [vmem:[#allocation7 + $0x20] sm:$0xff]  ;;  %v250_v37 = vld [vmem:[#allocation7 + $0x28] sm:$0xff] }
  0x51   :  { %472 = vmatprep.subr.bf16.mxu1 %v623_v0  ;;  %v494_v35 = vpack.c.bf16 %v248_v34, %v247_v32  ;;  %v497_v38 = vpack.c.bf16 %v250_v37, %v249_v36  ;;  %v251_v39 = vld [vmem:[#allocation7 + $0x30] sm:$0xff]  ;;  %v252_v40 = vld [vmem:[#allocation7 + $0x38] sm:$0xff]  ;;  %v253_v42 = vld [vmem:[#allocation7 + $0x40] sm:$0xff] }
  0x52   :  { %492 = vmatpush3.bf16.msra.mxu0 %v491_v33  ;;  %v500_v41 = vpack.c.bf16 %v252_v40, %v251_v39  ;;  %v254_v43 = vld [vmem:[#allocation7 + $0x48] sm:$0xff]  ;;  %v255_v45 = vld [vmem:[#allocation7 + $0x50] sm:$0xff]  ;;  %v256_v46 = vld [vmem:[#allocation7 + $0x58] sm:$0xff] }
  0x53   :  { %493 = vmatprep.subr.bf16.mxu0 %v623_v0  ;;  %v503_v44 = vpack.c.bf16 %v254_v43, %v253_v42  ;;  %v506_v47 = vpack.c.bf16 %v256_v46, %v255_v45  ;;  %v257_v48 = vld [vmem:[#allocation7 + $0x60] sm:$0xff]  ;;  %v258_v49 = vld [vmem:[#allocation7 + $0x68] sm:$0xff]  ;;  %v345_v51 = vld [vmem:[#allocation4 + $0x10] ss:$0 sm:$0xff] }
  0x54   :  { %474 = vmatpush3.bf16.msra.mxu1 %v473_v14  ;;  %v509_v50 = vpack.c.bf16 %v258_v49, %v257_v48  ;;  %v259_v56 = vld [vmem:[#allocation7 + $0x70] sm:$0xff]  ;;  %v260_v57 = vld [vmem:[#allocation7 + $0x78] sm:$0xff] }
  0x55   :  { %475 = vmatprep.subr.bf16.mxu1 %v623_v0  ;;  %v512_v58 = vpack.c.bf16 %v260_v57, %v259_v56  ;;  %v347_v59 = vld [vmem:[#allocation6 + $0x80] ss:$0 sm:$0xff] }
  0x56   :  { %495 = vmatpush3.bf16.msra.mxu0 %v494_v35 }
  0x57   :  { %496 = vmatprep.subr.bf16.mxu0 %v623_v0 }
  0x58   :  { %477 = vmatpush3.bf16.msra.mxu1 %v476_v17 }
  0x59   :  { %478 = vmatprep.subr.bf16.mxu1 %v623_v0 }
  0x5a   :  { %498 = vmatpush3.bf16.msra.mxu0 %v497_v38 }
  0x5b   :  { %499 = vmatprep.subr.bf16.mxu0 %v623_v0 }
  0x5c   :  { %480 = vmatpush3.bf16.msra.mxu1 %v479_v20 }
  0x5d   :  { %481 = vmatprep.subr.bf16.mxu1 %v623_v0 }
  0x5e   :  { %501 = vmatpush3.bf16.msra.mxu0 %v500_v41 }
  0x5f   :  { %502 = vmatprep.subr.bf16.mxu0 %v623_v0 }
  0x60   :  { %483 = vmatpush3.bf16.msra.mxu1 %v482_v23 }
  0x61   :  { %484 = vmatprep.subr.bf16.mxu1 %v623_v0 }
  0x62   :  { %504 = vmatpush3.bf16.msra.mxu0 %v503_v44 }
  0x63   :  { %505 = vmatprep.subr.bf16.mxu0 %v623_v0 }
  0x64   :  { %486 = vmatpush3.bf16.msra.mxu1 %v485_v26 }
  0x65   :  { %487 = vmatprep.subr.bf16.mxu1 %v623_v0 }
  0x66   :  { %507 = vmatpush3.bf16.msra.mxu0 %v506_v47 }
  0x67   :  { %508 = vmatprep.subr.bf16.mxu0 %v623_v0 }
  0x68   :  { %489 = vmatpush3.bf16.msra.mxu1 %v488_v29 }
  0x6a   :  { %510 = vmatpush3.bf16.msra.mxu0 %v509_v50 }
  0x6b   :  { %511 = vmatprep.subr.bf16.mxu0 %v623_v0  ;;  %v348_v0 = vld [vmem:[#allocation7 + $0x80] ss:$0 sm:$0xff] }
  0x6e   :  { %513 = vmatpush3.bf16.msra.mxu0 %v512_v58 }
 0x122   :  { %v148_v52 = vpop.f32.mrb[0].mxu0 }
 0x123   :  { %v149_v53 = vadd.f32 %v345_v51, %v148_v52  ;;  %v392_v54 = vpop.f32.mrb[1].mxu0 }
 0x125   :  { %v152_v55 = vmax.f32 %v149_v53, 0.0 }
 0x127   :  { %336 = vst [vmem:[%s738_s4] sm:$0xff] %v152_v55  ;;  %426 = vmatmul.mubr.f32.vlgmr.msra.gmra.mrb[0].mxu1 %v152_v55 }
 0x1fa   :  { %v240_v60 = vpop.f32.mrb[0].mxu1 }
 0x1fb   :  { %v241_v61 = vadd.f32 %v347_v59, %v240_v60  ;;  %v427_v62 = vpop.f32.mrb[1].mxu1 }
 0x1fd   :  { %v244_v63 = vmax.f32 %v241_v61, 0.0 }
 0x1ff   :  { %461 = vmatmul.mubr.f32.vlgmr.msra.gmra.mrb[2].mxu0 %v244_v63 }
 0x2d2   :  { %v332_v1 = vpop.f32.mrb[2].mxu0 }
 0x2d3   :  { %v333_v2 = vadd.f32 %v348_v0, %v332_v1  ;;  %v462_v3 = vpop.f32.mrb[3].mxu0 }
 0x2d5   :  { %337 = vst [vmem:[%s738_s4 + $0x8] sm:$0xff] %v333_v2 }
 0x2d6   :  { %342 = vsyncpa [#allocation3], 1 }
 0x2d7   :  { %343 = vsyncpa [#allocation5], 1 }
 0x2d8   :  { %344 = vsyncpa [#allocation8], 1 }

</bundles_post_ra>
